<compile_context>
chip_gen: v7x
topology: tpu7x:2x2x1
jax: 0.10.0
libtpu: 0.0.40
codegen_flags: <defaults>
</compile_context>

<pallas_src>
import jax
import jax.numpy as jnp
from jax import lax
from jax.experimental import pallas as pl
from jax.experimental.pallas import tpu as pltpu


def _round_up(x, m):
    return (x + m - 1) // m * m


def ensemble_kernel(gates_ref, xs_ref, xf_ref, ws_ref, wf_ref, bs_ref, bf_ref,
                    out_ref):
    """One batch tile, computed transposed: lanes carry batch rows."""
    # (nc, F) x (tb, F) -> (nc, tb): contract the feature dims (A @ B^T).
    dn = (((1,), (1,)), ((), ()))
    s_logits = lax.dot_general(ws_ref[...], xs_ref[...], dn,
                               preferred_element_type=jnp.float32) + bs_ref[...]
    f_logits = lax.dot_general(wf_ref[...], xf_ref[...], dn,
                               preferred_element_type=jnp.float32) + bf_ref[...]

    def scaled_softmax(z, gate):
        # Softmax over classes (sublane axis); batch lanes stay dense.
        z = z - jnp.max(z, axis=0, keepdims=True)
        e = jnp.exp(z)
        inv = pl.reciprocal(jnp.sum(e, axis=0, keepdims=True), approx=True)
        return e * (gate * inv)            # gate folded into the (1, tb) scale

    out = (scaled_softmax(s_logits, gates_ref[0]) +
           scaled_softmax(f_logits, gates_ref[1]))
    out_ref[...] = out.astype(out_ref.dtype)


def _choose_batch_tiling(batch, block_batch):
    # Single full-array tile: always legal (block == full dims), zero padding.
    if batch <= block_batch and (batch % 128 != 0 or batch < 256):
        return batch, 1, batch
    # Multi-tile: the batch is the lane axis of the output block, so tiles
    # must be multiples of 128.  Aim for >= 2 tiles (v7x megacore).
    n_tiles = max(pl.cdiv(batch, block_batch), 2)
    tb = _round_up(pl.cdiv(batch, n_tiles), 128)
    padded = _round_up(batch, tb)
    return tb, padded // tb, padded


def voting_ensemble(speech_weight, facial_weight,
                    speech_input, ws, bs,
                    facial_input, wf, bf,
                    *, block_batch=8192):
    batch = speech_input.shape[0]
    s_feat, num_classes = ws.shape
    f_feat = wf.shape[0]

    # Tiny transposed weight / bias tiles (resident in VMEM across all tiles).
    ws_t = ws.T.astype(speech_input.dtype)                     # (nc, s_feat)
    wf_t = wf.T.astype(facial_input.dtype)                     # (nc, f_feat)
    bs_t = jnp.reshape(bs, (num_classes, 1)).astype(jnp.float32)
    bf_t = jnp.reshape(bf, (num_classes, 1)).astype(jnp.float32)

    # Gate scalars: sigmoid + final normalization folded here (2 scalars).
    sw = jax.nn.sigmoid(speech_weight)
    fw = jax.nn.sigmoid(facial_weight)
    gates = (jnp.stack([sw, fw]) / (sw + fw)).reshape((2,)).astype(jnp.float32)

    tb, n_tiles, padded = _choose_batch_tiling(batch, block_batch)
    xs, xf = speech_input, facial_input
    if padded != batch:
        # TODO(synk): an in-kernel ragged-tail mask would avoid this copy; it
        # only triggers for batch > block_batch that is not 128-aligned.
        xs = jnp.pad(xs, ((0, padded - batch), (0, 0)))
        xf = jnp.pad(xf, ((0, padded - batch), (0, 0)))

    grid_spec = pltpu.PrefetchScalarGridSpec(
        num_scalar_prefetch=1,                        # normalized gate scalars
        grid=(n_tiles,),
        in_specs=[
            # activations: one batch tile per grid step, native dtype
            pl.BlockSpec((tb, s_feat), lambda i, g: (i, 0)),
            pl.BlockSpec((tb, f_feat), lambda i, g: (i, 0)),
            # weights / biases: same block every step -> DMA'd once, resident
            pl.BlockSpec((num_classes, s_feat), lambda i, g: (0, 0)),
            pl.BlockSpec((num_classes, f_feat), lambda i, g: (0, 0)),
            pl.BlockSpec((num_classes, 1), lambda i, g: (0, 0)),
            pl.BlockSpec((num_classes, 1), lambda i, g: (0, 0)),
        ],
        out_specs=pl.BlockSpec((num_classes, tb), lambda i, g: (0, i)),
    )

    feat = s_feat + f_feat
    act_bytes = (xs.dtype.itemsize * padded * s_feat +
                 xf.dtype.itemsize * padded * f_feat)
    cost = pl.CostEstimate(
        flops=2 * padded * feat * num_classes + 10 * padded * num_classes,
        transcendentals=2 * padded * num_classes,
        bytes_accessed=act_bytes + 4 * padded * num_classes)

    out_t = pl.pallas_call(
        ensemble_kernel,
        out_shape=jax.ShapeDtypeStruct((num_classes, padded), jnp.float32),
        grid_spec=grid_spec,
        compiler_params=pltpu.CompilerParams(
            dimension_semantics=("parallel",)),        # megacore on v7x
        cost_estimate=cost,
    )(gates, xs, xf, ws_t, wf_t, bs_t, bf_t)

    # Untranspose the small output slab back to (batch, num_classes).
    return out_t[:, :batch].T


def reference(speech_weight, facial_weight, speech_input, ws, bs,
              facial_input, wf, bf):
    s_logits = speech_input.astype(jnp.float32) @ ws + bs
    f_logits = facial_input.astype(jnp.float32) @ wf + bf
    sw = jax.nn.sigmoid(speech_weight)
    fw = jax.nn.sigmoid(facial_weight)
    sp = jax.nn.softmax(s_logits, axis=1) * sw
    fp = jax.nn.softmax(f_logits, axis=1) * fw
    return (sp + fp) / (sw + fw)


if __name__ == "__main__":
    key = jax.random.PRNGKey(0)
    k1, k2, k3, k4, k5, k6, k7, k8 = jax.random.split(key, 8)

    batch = 20                 # odd size -> exercises the no-pad full-tile path
    speech_features = 32
    facial_features = 32
    num_classes = 8            # emotion classes

    speech_input = jax.random.normal(k1, (batch, speech_features), jnp.float32)
    facial_input = jax.random.normal(k2, (batch, facial_features), jnp.float32)

    # Deterministic (frozen) sub-model parameters.
    ws = jax.random.normal(k3, (speech_features, num_classes), jnp.float32) * 0.1
    bs = jax.random.normal(k4, (1, num_classes), jnp.float32) * 0.1
    wf = jax.random.normal(k5, (facial_features, num_classes), jnp.float32) * 0.1
    bf = jax.random.normal(k6, (1, num_classes), jnp.float32) * 0.1

    # Ensemble weights, initialized to 0.5 as in nn.Parameter(torch.tensor(0.5)).
    speech_weight = jnp.array(0.5, jnp.float32)
    facial_weight = jnp.array(0.5, jnp.float32)

    ref = reference(speech_weight, facial_weight, speech_input, ws, bs,
                    facial_input, wf, bf)

    # 1) f32 activations, single full-array tile (no padding).
    out = voting_ensemble(speech_weight, facial_weight, speech_input, ws, bs,
                          facial_input, wf, bf)
    out = jax.block_until_ready(out)
    assert out.shape == (batch, num_classes)
    assert jnp.allclose(out, ref, atol=5e-3, rtol=5e-3)   # approx-rcp tolerance

    # 2) bf16 activation streaming (halves HBM read traffic; f32 accumulation).
    out_bf16 = voting_ensemble(speech_weight, facial_weight,
                               speech_input.astype(jnp.bfloat16), ws, bs,
                               facial_input.astype(jnp.bfloat16), wf, bf)
    out_bf16 = jax.block_until_ready(out_bf16)
    assert jnp.allclose(out_bf16, ref, atol=2e-2, rtol=2e-2)

    # 3) multi-tile grid (2 lane-aligned tiles, no padding) for megacore path.
    big_batch = 512
    big_s = jax.random.normal(k7, (big_batch, speech_features), jnp.float32)
    big_f = jax.random.normal(k8, (big_batch, facial_features), jnp.float32)
    out_big = voting_ensemble(speech_weight, facial_weight, big_s, ws, bs,
                              big_f, wf, bf, block_batch=256)
    out_big = jax.block_until_ready(out_big)
    ref_big = reference(speech_weight, facial_weight, big_s, ws, bs,
                        big_f, wf, bf)
    assert out_big.shape == (big_batch, num_classes)
    assert jnp.allclose(out_big, ref_big, atol=5e-3, rtol=5e-3)

    print("KERNEL_OK")
</pallas_src>

<mosaic_0001>
module attributes {stable_mosaic.version = 11 : i64} {
  func.func @ensemble_kernel(%arg0: i32, %arg1: memref<2xf32, #tpu.memory_space<smem>>, %arg2: memref<20x32xf32, #tpu.memory_space<vmem>>, %arg3: memref<20x32xf32, #tpu.memory_space<vmem>>, %arg4: memref<8x32xf32, #tpu.memory_space<vmem>>, %arg5: memref<8x32xf32, #tpu.memory_space<vmem>>, %arg6: memref<8x1xf32, #tpu.memory_space<vmem>>, %arg7: memref<8x1xf32, #tpu.memory_space<vmem>>, %arg8: memref<8x20xf32, #tpu.memory_space<vmem>>) attributes {dimension_semantics = [#tpu.dimension_semantics<parallel>], iteration_bounds = array<i64: 1>, scalar_prefetch = 1 : i64, scratch_operands = 0 : i64, tpu.core_type = #tpu.core_type<tc>, window_params = [{transform_indices = @transform_0, window_bounds = array<i64: 20, 32>}, {transform_indices = @transform_1, window_bounds = array<i64: 20, 32>}, {pipeline_mode = #tpu.pipeline_mode<synchronous>, transform_indices = @transform_2, window_bounds = array<i64: 8, 32>}, {pipeline_mode = #tpu.pipeline_mode<synchronous>, transform_indices = @transform_3, window_bounds = array<i64: 8, 32>}, {pipeline_mode = #tpu.pipeline_mode<synchronous>, transform_indices = @transform_4, window_bounds = array<i64: 8, 1>}, {pipeline_mode = #tpu.pipeline_mode<synchronous>, transform_indices = @transform_5, window_bounds = array<i64: 8, 1>}, {transform_indices = @transform_6, window_bounds = array<i64: 8, 20>}]} {
    %c0 = arith.constant 0 : index
    %c0_0 = arith.constant 0 : index
    %0 = vector.load %arg4[%c0, %c0_0] : memref<8x32xf32, #tpu.memory_space<vmem>>, vector<8x32xf32>
    %c0_1 = arith.constant 0 : index
    %c0_2 = arith.constant 0 : index
    %1 = vector.load %arg2[%c0_1, %c0_2] : memref<20x32xf32, #tpu.memory_space<vmem>>, vector<20x32xf32>
    %cst = arith.constant dense<0.000000e+00> : vector<8x20xf32>
    %2 = tpu.matmul %0, %1, %cst {dimension_numbers = #tpu.dot_dimension_numbers<[1], [1], [0], [0], [0, 0, 1, 0], [], []>} : vector<8x32xf32>, vector<20x32xf32>, vector<8x20xf32> -> vector<8x20xf32>
    %c0_3 = arith.constant 0 : index
    %c0_4 = arith.constant 0 : index
    %3 = vector.load %arg6[%c0_3, %c0_4] : memref<8x1xf32, #tpu.memory_space<vmem>>, vector<8x1xf32>
    %4 = vector.broadcast %3 : vector<8x1xf32> to vector<8x20xf32>
    %5 = arith.addf %2, %4 : vector<8x20xf32>
    %c0_5 = arith.constant 0 : index
    %c0_6 = arith.constant 0 : index
    %6 = vector.load %arg5[%c0_5, %c0_6] : memref<8x32xf32, #tpu.memory_space<vmem>>, vector<8x32xf32>
    %c0_7 = arith.constant 0 : index
    %c0_8 = arith.constant 0 : index
    %7 = vector.load %arg3[%c0_7, %c0_8] : memref<20x32xf32, #tpu.memory_space<vmem>>, vector<20x32xf32>
    %cst_9 = arith.constant dense<0.000000e+00> : vector<8x20xf32>
    %8 = tpu.matmul %6, %7, %cst_9 {dimension_numbers = #tpu.dot_dimension_numbers<[1], [1], [0], [0], [0, 0, 1, 0], [], []>} : vector<8x32xf32>, vector<20x32xf32>, vector<8x20xf32> -> vector<8x20xf32>
    %c0_10 = arith.constant 0 : index
    %c0_11 = arith.constant 0 : index
    %9 = vector.load %arg7[%c0_10, %c0_11] : memref<8x1xf32, #tpu.memory_space<vmem>>, vector<8x1xf32>
    %10 = vector.broadcast %9 : vector<8x1xf32> to vector<8x20xf32>
    %11 = arith.addf %8, %10 : vector<8x20xf32>
    %c0_12 = arith.constant 0 : index
    %12 = memref.load %arg1[%c0_12] : memref<2xf32, #tpu.memory_space<smem>>
    %cst_13 = arith.constant dense<0xFF800000> : vector<20xf32>
    %13 = vector.multi_reduction <maximumf>, %5, %cst_13 [0] : vector<8x20xf32> to vector<20xf32>
    %14 = vector.shape_cast %13 : vector<20xf32> to vector<1x20xf32>
    %15 = vector.broadcast %14 : vector<1x20xf32> to vector<8x20xf32>
    %16 = arith.subf %5, %15 : vector<8x20xf32>
    %17 = math.exp %16 : vector<8x20xf32>
    %cst_14 = arith.constant dense<0.000000e+00> : vector<20xf32>
    %18 = vector.multi_reduction <add>, %17, %cst_14 [0] : vector<8x20xf32> to vector<20xf32>
    %19 = vector.shape_cast %18 : vector<20xf32> to vector<1x20xf32>
    %20 = tpu.reciprocal %19 {approx = true} : vector<1x20xf32> -> vector<1x20xf32>
    %21 = vector.broadcast %12 : f32 to vector<1x20xf32>
    %22 = arith.mulf %21, %20 : vector<1x20xf32>
    %23 = vector.broadcast %22 : vector<1x20xf32> to vector<8x20xf32>
    %24 = arith.mulf %17, %23 : vector<8x20xf32>
    %c1 = arith.constant 1 : index
    %25 = memref.load %arg1[%c1] : memref<2xf32, #tpu.memory_space<smem>>
    %cst_15 = arith.constant dense<0xFF800000> : vector<20xf32>
    %26 = vector.multi_reduction <maximumf>, %11, %cst_15 [0] : vector<8x20xf32> to vector<20xf32>
    %27 = vector.shape_cast %26 : vector<20xf32> to vector<1x20xf32>
    %28 = vector.broadcast %27 : vector<1x20xf32> to vector<8x20xf32>
    %29 = arith.subf %11, %28 : vector<8x20xf32>
    %30 = math.exp %29 : vector<8x20xf32>
    %cst_16 = arith.constant dense<0.000000e+00> : vector<20xf32>
    %31 = vector.multi_reduction <add>, %30, %cst_16 [0] : vector<8x20xf32> to vector<20xf32>
    %32 = vector.shape_cast %31 : vector<20xf32> to vector<1x20xf32>
    %33 = tpu.reciprocal %32 {approx = true} : vector<1x20xf32> -> vector<1x20xf32>
    %34 = vector.broadcast %25 : f32 to vector<1x20xf32>
    %35 = arith.mulf %34, %33 : vector<1x20xf32>
    %36 = vector.broadcast %35 : vector<1x20xf32> to vector<8x20xf32>
    %37 = arith.mulf %30, %36 : vector<8x20xf32>
    %38 = arith.addf %24, %37 : vector<8x20xf32>
    %c0_17 = arith.constant 0 : index
    %c0_18 = arith.constant 0 : index
    %39 = vector.load %arg8[%c0_17, %c0_18] : memref<8x20xf32, #tpu.memory_space<vmem>>, vector<8x20xf32>
    tpu.vector_store %arg8[%c0_17, %c0_18], %38 {strides = array<i32>} : memref<8x20xf32, #tpu.memory_space<vmem>>, vector<8x20xf32>,
    return
  }
  func.func @transform_0(%arg0: i32, %arg1: memref<2xf32, #tpu.memory_space<smem>>) -> (i32, i32) {
    %c0_i32 = arith.constant 0 : i32
    %c0_i32_0 = arith.constant 0 : i32
    return %arg0, %c0_i32 : i32, i32
  }
  func.func @transform_1(%arg0: i32, %arg1: memref<2xf32, #tpu.memory_space<smem>>) -> (i32, i32) {
    %c0_i32 = arith.constant 0 : i32
    %c0_i32_0 = arith.constant 0 : i32
    return %arg0, %c0_i32 : i32, i32
  }
  func.func @transform_2(%arg0: i32, %arg1: memref<2xf32, #tpu.memory_space<smem>>) -> (i32, i32) {
    %c0_i32 = arith.constant 0 : i32
    %c0_i32_0 = arith.constant 0 : i32
    %c0_i32_1 = arith.constant 0 : i32
    return %c0_i32, %c0_i32_0 : i32, i32
  }
  func.func @transform_3(%arg0: i32, %arg1: memref<2xf32, #tpu.memory_space<smem>>) -> (i32, i32) {
    %c0_i32 = arith.constant 0 : i32
    %c0_i32_0 = arith.constant 0 : i32
    %c0_i32_1 = arith.constant 0 : i32
    return %c0_i32, %c0_i32_0 : i32, i32
  }
  func.func @transform_4(%arg0: i32, %arg1: memref<2xf32, #tpu.memory_space<smem>>) -> (i32, i32) {
    %c0_i32 = arith.constant 0 : i32
    %c0_i32_0 = arith.constant 0 : i32
    %c0_i32_1 = arith.constant 0 : i32
    return %c0_i32, %c0_i32_0 : i32, i32
  }
  func.func @transform_5(%arg0: i32, %arg1: memref<2xf32, #tpu.memory_space<smem>>) -> (i32, i32) {
    %c0_i32 = arith.constant 0 : i32
    %c0_i32_0 = arith.constant 0 : i32
    %c0_i32_1 = arith.constant 0 : i32
    return %c0_i32, %c0_i32_0 : i32, i32
  }
  func.func @transform_6(%arg0: i32, %arg1: memref<2xf32, #tpu.memory_space<smem>>) -> (i32, i32) {
    %c0_i32 = arith.constant 0 : i32
    %c0_i32_0 = arith.constant 0 : i32
    return %c0_i32, %arg0 : i32, i32
  }
}

</mosaic_0001>

<bundles_post_ra>
// kernel: tpu_custom_call.1
= control target key start
LH: loop header
LB: loop body
LE: loop exit
PB: predicated region body
PF: predicated region fallthrough
CT: control target
= control target key end

     0   :  { %s571_s0 = inlined_call_operand.vmem [shape: f32[2], index: 0, kind: input, shape index: {}]   ;;  %s572_s1 = inlined_call_operand.hbm [shape: f32[20,32], index: 1, kind: input, shape index: {}]   ;;  %s573_s2 = inlined_call_operand.vmem [shape: f32[20,32], index: 2, kind: input, shape index: {}]   ;;  %s574_s3 = inlined_call_operand.hbm [shape: f32[8,32], index: 3, kind: input, shape index: {}]   ;;  %s575_s4 = inlined_call_operand.vmem [shape: f32[8,32], index: 4, kind: input, shape index: {}]   ;;  %s576_s5 = inlined_call_operand.vmem [shape: f32[8,1], index: 5, kind: input, shape index: {}]   ;;  %s577_s6 = inlined_call_operand.vmem [shape: f32[8,1], index: 6, kind: input, shape index: {}]   ;;  %s578_s7 = inlined_call_operand.hbm [shape: f32[8,20], index: 7, kind: output, shape index: {}]  }
   0x1   :  { %s12_s26 = sshll.u32 %s571_s0, 4  ;;  %s13_s26 = int_to_ptr.vmem [resolvable:$true] %s12_s26 }
   0x2   :  { %s367_s27 = scalar_lea.vmem %s13_s26, 16  ;;  %p372_p1 = scmp.lt.s32.totalorder %s13_s26, %s13_s26 }
   0x3   :  { %p368_p0 = scmp.ne.s32.totalorder %s13_s26, %s367_s27  ;;  %p373_p2 = scmp.lt.s32.totalorder %s367_s27, %s367_s27 }
   0x5   :  { %p374_p3 = por %p373_p2, %p372_p1 }
   0x7   :  { %p375_p4 = pnand %p374_p3, %p368_p0 }
   0x9   :  { %378 = shalt.err (!%p375_p4)  }
   0xa   :  { %s453_s28 = smov [#allocation3]  }
   0xb   :  { %15 = dma.vmem_to_smem %s13_s26, 16, %s453_s28, [#allocation2] }
   0xc   :  { %445 = dma.done.wait [#allocation2], 16 }
   0xd   :  { %446 = vsyncadd [#allocation2], 4294967280 }
   0xe   :  { %17 = sfence }
   0xf   :  { %18 = vsyncpa [#allocation5], 0 }
  0x10   :  { %19 = vsyncpa [#allocation8], 0 }
  0x11   :  { %20 = vsyncpa [#allocation6], 0  ;;  %s454_s29 = smov [#allocation4]   ;;  %s379_s9 = scalar_lea.hbm %s572_s1, 384 }
  0x12   :  { %s26_s30 = sshll.u32 %s454_s29, 4  ;;  %p380_p5 = scmp.ne.s32.totalorder %s572_s1, %s379_s9  ;;  %s27_s30 = int_to_ptr.vmem [resolvable:$true] %s26_s30 }
  0x13   :  { %p383_p6 = scmp.lt.u32.totalorder %s379_s9, %s572_s1 }
  0x15   :  { %p385_p7 = pnand %p383_p6, %p380_p5 }
  0x17   :  { %388 = shalt.err (!%p385_p7)
}
  0x18   :  { %s389_s14 = scalar_lea.vmem %s27_s30, 384  ;;  %p394_p9 = scmp.lt.s32.totalorder %s27_s30, %s27_s30 }
  0x19   :  { %p390_p8 = scmp.ne.s32.totalorder %s27_s30, %s389_s14  ;;  %p395_p10 = scmp.lt.s32.totalorder %s389_s14, %s389_s14 }
  0x1b   :  { %p396_p11 = por %p395_p10, %p394_p9 }
  0x1d   :  { %p397_p12 = pnand %p396_p11, %p390_p8 }
  0x1f   :  { %400 = shalt.err (!%p397_p12)
}
  0x20   :  { %s455_s15 = smov 128   ;;  %s456_s16 = smov 8  }
  0x21   :  { %32 = dma.hbm_to_vmem [thread:$0]  %s572_s1, 384, %s27_s30, [#allocation5], %s455_s15, %s455_s15, %s456_s16  }
  0x22   :  { %s457_s19 = smov [#allocation7]   ;;  %s401_s23 = scalar_lea.hbm %s574_s3, 128 }
  0x23   :  { %s41_s20 = sshll.u32 %s457_s19, 4  ;;  %p402_p13 = scmp.ne.s32.totalorder %s574_s3, %s401_s23  ;;  %s42_s20 = int_to_ptr.vmem [resolvable:$true] %s41_s20 }
  0x24   :  { %p405_p0 = scmp.lt.u32.totalorder %s401_s23, %s574_s3 }
  0x26   :  { %p407_p1 = pnand %p405_p0, %p402_p13 }
  0x28   :  { %410 = shalt.err (!%p407_p1)
}
  0x29   :  { %s411_s28 = scalar_lea.vmem %s42_s20, 128  ;;  %p416_p3 = scmp.lt.s32.totalorder %s42_s20, %s42_s20 }
  0x2a   :  { %p412_p2 = scmp.ne.s32.totalorder %s42_s20, %s411_s28  ;;  %p417_p4 = scmp.lt.s32.totalorder %s411_s28, %s411_s28 }
  0x2c   :  { %p418_p5 = por %p417_p4, %p416_p3 }
  0x2e   :  { %p419_p6 = pnand %p418_p5, %p412_p2 }
  0x30   :  { %422 = shalt.err (!%p419_p6)
}
  0x31   :  { %44 = dma.hbm_to_vmem [thread:$0]  %s574_s3, 128, %s42_s20, [#allocation8]  }
  0x32   :  { %447 = dma.done.wait [#allocation5], 384  }
  0x33   :  { %448 = vsyncadd [#allocation5], 4294966912 }
  0x34   :  { %449 = dma.done.wait [#allocation8], 128  }
  0x35   :  { %450 = vsyncadd [#allocation8], 4294967168  ;;  %v458_v0 = vmov 0.0|0.0   ;;  %vm459_vm0 = vmmov 0   ;;  %v460_v1 = vmov 0.0   ;;  %vm67_vm1 = vcmask 261120  }
  0x36   :  { %340 = vmatprep.subr.bf16.mxu0 %v458_v0  ;;  %344 = vmatprep.subr.bf16.mxu1 %v458_v0  ;;  %v461_v2 = vmov 0   ;;  %vm342_vm2 = vmpackc.low %vm67_vm1, %vm67_vm1  ;;  %v58_v3 = vld [vmem:[#allocation4] sm:$0xff]  ;;  %v59_v4 = vld [vmem:[#allocation4 + $0x8] sm:$0xff]  ;;  %vm243_vm3 = vcmask 162816  }
  0x37   :  { %328 = vmatprep.mubr.msk.f32.mxu0 %vm459_vm0, %v460_v1  ;;  %337 = vmatprep.mubr.msk.f32.mxu1 %vm459_vm0, %v460_v1  ;;  %v151_v5 = vld [vmem:[%s573_s2] sm:$0xff]  ;;  %v341_v6 = vpack.c.bf16 %v59_v4, %v58_v3  ;;  %v152_v7 = vld [vmem:[%s573_s2 + $0x8] sm:$0xff]  ;;  %v60_v11 = vld [vmem:[#allocation4 + $0x10] sm:$0xf] }
  0x38   :  { %358 = vset.pattern.permute.xlu0 %v461_v2  ;;  %v345_v8 = vpack.c.bf16 %v152_v7, %v151_v5  ;;  %v61_v9 = vld [vmem:[%s576_s5] sm:$0xff]  ;;  %v153_v12 = vld [vmem:[%s573_s2 + $0x10] sm:$0xf]  ;;  %v57_v13 = vld [vmem:[#allocation7] sm:$0xff]  ;;  %s242_s2 = sld [smem:[#allocation3]] }
  0x39   :  { %343 = vmatpush3.bf16.xpose.msk.msra.mxu0 %vm342_vm2, %v341_v6  ;;  %64 = vperm.xlu0 %358, %v61_v9   ;;  %v154_v10 = vld [vmem:[%s577_s6] sm:$0xff]  ;;  %s462_s6 = smov [#allocation9]  }
  0x3a   :  { %347 = vmatpush3.bf16.xpose.msk.msra.mxu1 %vm342_vm2, %v345_v8  ;;  %326 = vmatprep.subr.mxu0 %v460_v1  ;;  %v150_v14 = vld [vmem:[%s575_s4] sm:$0xff]  ;;  %s313_s4 = sld [smem:[#allocation3 + $0x1]]  ;;  %s295_s16 = sshll.u32 %s462_s6, 4  ;;  %s296_s16 = int_to_ptr.vmem [resolvable:$true] %s295_s16 }
  0x3b   :  { %335 = vmatprep.subr.mxu1 %v460_v1  ;;  %s423_s17 = scalar_lea.vmem %s296_s16, 128  ;;  %p428_p8 = scmp.lt.s32.totalorder %s296_s16, %s296_s16 }
  0x3c   :  { %p424_p7 = scmp.ne.s32.totalorder %s296_s16, %s423_s17  ;;  %p429_p9 = scmp.lt.s32.totalorder %s423_s17, %s423_s17 }
  0x3d   :  { %157 = vperm.xlu0 %358, %v154_v10  }
  0x3e   :  { %v262_v57 = vstv %s242_s2  ;;  %p430_p10 = por %p429_p9, %p428_p8 }
  0x40   :  { %v284_v58 = vstv %s313_s4  ;;  %p431_p11 = pnand %p430_p10, %p424_p7 }
  0x41   :  { %327 = vmatpush3.xpose.msk.msra.mxu0 %vm67_vm1, %v60_v11 }
  0x42   :  { %336 = vmatpush3.xpose.msk.msra.mxu1 %vm67_vm1, %v153_v12 }
  0x44   :  { %329 = vmatmul.mubr.msk.f32.vlgmr.msra.gmra.mrb[0].mxu0 %vm67_vm1, %v57_v13 }
  0x45   :  { %338 = vmatmul.mubr.msk.f32.vlgmr.msra.gmra.mrb[0].mxu1 %vm67_vm1, %v150_v14 }
  0xb8   :  { %v65_v15 = vpop.permute.xlu0 %64 }
  0xbc   :  { %v158_v16 = vpop.permute.xlu0 %157 }
 0x117   :  { %v146_v17 = vpop.f32.mrb[0].mxu0 }
 0x118   :  { %v147_v18 = vadd.f32 %v146_v17, %v65_v15  ;;  %v238_v19 = vpop.f32.mrb[0].mxu1  ;;  %v330_v20 = vpop.f32.mrb[1].mxu0 }
 0x119   :  { %v239_v21 = vadd.f32 %v238_v19, %v158_v16  ;;  %v339_v22 = vpop.f32.mrb[1].mxu1 }
 0x11a   :  { %v244_v23 = vsel %vm243_vm3, %v147_v18, -inf }
 0x11b   :  { %v245_v24 = vrot.slane %v244_v23, 4  ;;  %v266_v25 = vsel %vm243_vm3, %v239_v21, -inf }
 0x11c   :  { %v267_v26 = vrot.slane %v266_v25, 4 }
 0x11d   :  { %v246_v27 = vmax.f32 %v244_v23, %v245_v24 }
 0x11e   :  { %v268_v28 = vmax.f32 %v266_v25, %v267_v26 }
 0x11f   :  { %v247_v29 = vrot.slane %v246_v27, 2 }
 0x120   :  { %v269_v30 = vrot.slane %v268_v28, 2 }
 0x121   :  { %v248_v31 = vmax.f32 %v246_v27, %v247_v29 }
 0x122   :  { %v270_v32 = vmax.f32 %v268_v28, %v269_v30 }
 0x123   :  { %v249_v33 = vrot.slane %v248_v31, 1 }
 0x124   :  { %v271_v34 = vrot.slane %v270_v32, 1 }
 0x125   :  { %v250_v35 = vmax.f32 %v248_v31, %v249_v33 }
 0x126   :  { %v272_v36 = vmax.f32 %v270_v32, %v271_v34 }
 0x127   :  { %v251_v37 = vsub.f32 %v147_v18, %v250_v35 }
 0x128   :  { %v273_v38 = vsub.f32 %v239_v21, %v272_v36 }
 0x129   :  { %v252_v39 = vmul.f32 1.442695, %v251_v37 }
 0x12a   :  { %v274_v40 = vmul.f32 1.442695, %v273_v38 }
 0x12b   :  { %359 = vpow2.f32 %v252_v39 }
 0x12c   :  { %361 = vpow2.f32 %v274_v40 }
 0x135   :  { %v360_v41 = vpop.eup %359 }
 0x136   :  { %v362_v42 = vpop.eup %361  ;;  %v254_v43 = vsel %vm243_vm3, %v360_v41, 0.0 }
 0x137   :  { %v255_v44 = vrot.slane %v254_v43, 4  ;;  %v276_v45 = vsel %vm243_vm3, %v362_v42, 0.0 }
 0x138   :  { %v277_v46 = vrot.slane %v276_v45, 4 }
 0x139   :  { %v256_v47 = vadd.f32 %v255_v44, %v254_v43 }
 0x13a   :  { %v278_v48 = vadd.f32 %v277_v46, %v276_v45 }
 0x13b   :  { %v257_v49 = vrot.slane %v256_v47, 2 }
 0x13c   :  { %v279_v50 = vrot.slane %v278_v48, 2 }
 0x13d   :  { %v258_v51 = vadd.f32 %v257_v49, %v256_v47 }
 0x13e   :  { %v280_v52 = vadd.f32 %v279_v50, %v278_v48 }
 0x13f   :  { %v259_v53 = vrot.slane %v258_v51, 1 }
 0x140   :  { %v281_v54 = vrot.slane %v280_v52, 1 }
 0x141   :  { %v260_v55 = vadd.f32 %v259_v53, %v258_v51 }
 0x142   :  { %v282_v56 = vadd.f32 %v281_v54, %v280_v52 }
 0x143   :  { %363 = vrcp.f32 %v260_v55 }
 0x144   :  { %365 = vrcp.f32 %v282_v56 }
 0x14d   :  { %v364_v59 = vpop.eup %363 }
 0x14e   :  { %v366_v60 = vpop.eup %365  ;;  %v263_v61 = vmul.f32 %v364_v59, %v262_v57 }
 0x14f   :  { %v285_v62 = vmul.f32 %v366_v60, %v284_v58 }
 0x150   :  { %v264_v63 = vmul.f32 %v360_v41, %v263_v61 }
 0x151   :  { %v286_v0 = vmul.f32 %v362_v42, %v285_v62 }
 0x153   :  { %v287_v1 = vadd.f32 %v286_v0, %v264_v63 }
 0x155   :  { %288 = vst.msk [vmem:[#allocation9] sm:$0xff] %vm243_vm3, %v287_v1 }
 0x156   :  { %434 = shalt.err (!%p431_p11)
}
 0x157   :  { %s435_s20 = scalar_lea.hbm %s578_s7, 128 }
 0x158   :  { %p436_p12 = scmp.ne.s32.totalorder %s578_s7, %s435_s20  ;;  %p439_p13 = scmp.lt.u32.totalorder %s435_s20, %s578_s7 }
 0x15a   :  { %p441_p0 = pnand %p439_p13, %p436_p12 }
 0x15c   :  { %444 = shalt.err (!%p441_p0)
}
 0x15d   :  { %298 = dma.vmem_to_hbm [thread:$0]  %s296_s16, 128, %s578_s7, [#allocation6]  }
 0x15e   :  { %451 = dma.done.wait [#allocation6], 128  }
 0x15f   :  { %452 = vsyncadd [#allocation6], 4294967168 }
 0x160   :  { %302 = vsyncpa [#allocation5], 1 }
 0x161   :  { %303 = vsyncpa [#allocation8], 1 }
 0x162   :  { %304 = vsyncpa [#allocation6], 1 }

</bundles_post_ra>
